<compile_context>
chip_gen: v7x
topology: tpu7x:2x2x1
jax: 0.10.0
libtpu: 0.0.40
codegen_flags: <defaults>
</compile_context>

<pallas_src>
import functools

import jax
import jax.numpy as jnp
from jax import lax
from jax.experimental import pallas as pl
from jax.experimental.pallas import tpu as pltpu

_BN_EPS = 1e-3
_SELU_ALPHA = 1.6732632423543772
_SELU_SCALE = 1.0507009873554804
_VMEM_LIMIT = 32 * 1024 * 1024  # fits scoped VMEM on v5e/v6e/v7x


def _pair(v):
    return (v, v) if isinstance(v, int) else tuple(v)


def _round_up(x, m):
    return ((x + m - 1) // m) * m


def _pick_conv_tile(hw_pad, k, cout, budget=16 * 1024 * 1024):
    for t in (1024, 512, 256, 128):
        if hw_pad % t == 0:
            vmem = 4 * (2 * k * t + 2 * cout * t + 2 * cout * k)
            if vmem <= budget:
                return t
    return 128


def _pick_bn_tile(hw_pad, cout, budget=16 * 1024 * 1024):
    for t in (2048, 1024, 512, 256, 128):
        if hw_pad % t == 0 and 4 * 4 * cout * t <= budget:
            return t
    return 128


# ---------------------------------------------------------------------------
# Conv2d = im2col (wrapper) + Pallas tiled matmul
# ---------------------------------------------------------------------------
def _conv_mm_kernel(w_ref, b_ref, p_ref, o_ref):
    # w_ref: (Cout, K)  b_ref: (Cout, 1)  p_ref: (1, K, tHW)  o_ref: (1, Cout, tHW)
    acc = jnp.dot(w_ref[...], p_ref[0],
                  preferred_element_type=jnp.float32,
                  precision=lax.Precision.HIGHEST)
    acc = acc + b_ref[...].astype(jnp.float32)
    o_ref[0] = acc.astype(o_ref.dtype)


def _conv2d_group(x, weight, bias, stride, padding, dilation):
    """Single-group conv. Returns (y_flat (N, Cout, HW_pad), hw, hout, wout)."""
    n, cin, h, w = x.shape
    cout, cin_w, kh, kw = weight.shape
    assert cin == cin_w
    sh, sw = stride
    ph, pw = padding
    dh, dw = dilation
    hout = (h + 2 * ph - dh * (kh - 1) - 1) // sh + 1
    wout = (w + 2 * pw - dw * (kw - 1) - 1) // sw + 1
    hw = hout * wout
    hw_pad = _round_up(hw, 128)

    xp = jnp.pad(x, ((0, 0), (0, 0), (ph, ph), (pw, pw)))
    taps = []
    for ih in range(kh):
        for iw in range(kw):
            h0, w0 = ih * dh, iw * dw
            sl = xp[:, :, h0:h0 + (hout - 1) * sh + 1:sh,
                          w0:w0 + (wout - 1) * sw + 1:sw]
            taps.append(sl.reshape(n, cin, hw))
    # (N, K, HW) with K index = tap * Cin + c
    p = jnp.concatenate(taps, axis=1)
    if hw_pad != hw:
        p = jnp.pad(p, ((0, 0), (0, 0), (0, hw_pad - hw)))

    k = kh * kw * cin
    # weight (O, I, kh, kw) -> (O, kh, kw, I) -> (O, K); matches P's K ordering.
    w_mat = jnp.transpose(weight, (0, 2, 3, 1)).reshape(cout, k)
    b_vec = (bias if bias is not None
             else jnp.zeros((cout,), x.dtype)).reshape(cout, 1)

    thw = _pick_conv_tile(hw_pad, k, cout)
    grid = (n, hw_pad // thw)

    y_flat = pl.pallas_call(
        _conv_mm_kernel,
        out_shape=jax.ShapeDtypeStruct((n, cout, hw_pad), x.dtype),
        grid_spec=pltpu.PrefetchScalarGridSpec(
            num_scalar_prefetch=0,
            grid=grid,
            in_specs=[
                pl.BlockSpec((cout, k), lambda ni, hi: (0, 0)),
                pl.BlockSpec((cout, 1), lambda ni, hi: (0, 0)),
                pl.BlockSpec((1, k, thw), lambda ni, hi: (ni, 0, hi)),
            ],
            out_specs=pl.BlockSpec((1, cout, thw), lambda ni, hi: (ni, 0, hi)),
        ),
        compiler_params=pltpu.CompilerParams(
            dimension_semantics=("parallel", "parallel"),
            vmem_limit_bytes=_VMEM_LIMIT),
    )(w_mat, b_vec, p)
    return y_flat, hw, hout, wout


def conv2d_pallas(x, weight, bias, stride, padding, dilation, groups):
    if groups == 1:
        return _conv2d_group(x, weight, bias, stride, padding, dilation)
    cin = x.shape[1]
    cout = weight.shape[0]
    cin_g, cout_g = cin // groups, cout // groups
    outs = []
    hw = hout = wout = None
    for g in range(groups):
        xg = x[:, g * cin_g:(g + 1) * cin_g]
        wg = weight[g * cout_g:(g + 1) * cout_g]
        bg = None if bias is None else bias[g * cout_g:(g + 1) * cout_g]
        og, hw, hout, wout = _conv2d_group(xg, wg, bg, stride, padding, dilation)
        outs.append(og)
    return jnp.concatenate(outs, axis=1), hw, hout, wout


# ---------------------------------------------------------------------------
# BatchNorm2d (batch stats) + SELU: two tiled Pallas passes on (N, C, HW_pad)
# ---------------------------------------------------------------------------
def _bn_stats_kernel(y_ref, g_ref, b_ref, scale_ref, shift_ref, sum_sc, sq_sc,
                     *, hw, thw, inv_count, eps):
    ni = pl.program_id(0)
    hi = pl.program_id(1)

    @pl.when((ni == 0) & (hi == 0))
    def _():
        sum_sc[...] = jnp.zeros_like(sum_sc)
        sq_sc[...] = jnp.zeros_like(sq_sc)

    x = y_ref[0].astype(jnp.float32)                       # (C, tHW)
    col = hi * thw + lax.broadcasted_iota(jnp.int32, x.shape, 1)
    x = jnp.where(col < hw, x, 0.0)                        # mask padded tail
    sum_sc[...] += jnp.sum(x, axis=1, keepdims=True)
    sq_sc[...] += jnp.sum(x * x, axis=1, keepdims=True)

    @pl.when((ni == pl.num_programs(0) - 1) & (hi == pl.num_programs(1) - 1))
    def _():
        mean = sum_sc[...] * inv_count
        var = jnp.maximum(sq_sc[...] * inv_count - mean * mean, 0.0)
        inv_std = lax.rsqrt(var + eps)
        scale = g_ref[...].astype(jnp.float32) * inv_std
        scale_ref[...] = scale
        shift_ref[...] = b_ref[...].astype(jnp.float32) - mean * scale


def _bn_selu_apply_kernel(y_ref, scale_ref, shift_ref, o_ref):
    x = y_ref[0].astype(jnp.float32)                       # (C, tHW)
    z = x * scale_ref[...] + shift_ref[...]
    neg = _SELU_ALPHA * (jnp.exp(z) - 1.0)   # exp on EUP; inf in untaken branch is benign
    o_ref[0] = (_SELU_SCALE * jnp.where(z > 0, z, neg)).astype(o_ref.dtype)


def bn_selu_pallas(y_flat, gamma, beta, hw):
    n, c, hw_pad = y_flat.shape
    thw = _pick_bn_tile(hw_pad, c)
    grid = (n, hw_pad // thw)
    g2 = gamma.reshape(c, 1).astype(jnp.float32)
    b2 = beta.reshape(c, 1).astype(jnp.float32)

    stats_kernel = functools.partial(
        _bn_stats_kernel, hw=hw, thw=thw, inv_count=1.0 / float(n * hw), eps=_BN_EPS)

    scale, shift = pl.pallas_call(
        stats_kernel,
        out_shape=(jax.ShapeDtypeStruct((c, 1), jnp.float32),
                   jax.ShapeDtypeStruct((c, 1), jnp.float32)),
        grid_spec=pltpu.PrefetchScalarGridSpec(
            num_scalar_prefetch=0,
            grid=grid,
            in_specs=[
                pl.BlockSpec((1, c, thw), lambda ni, hi: (ni, 0, hi)),
                pl.BlockSpec((c, 1), lambda ni, hi: (0, 0)),
                pl.BlockSpec((c, 1), lambda ni, hi: (0, 0)),
            ],
            out_specs=[
                pl.BlockSpec((c, 1), lambda ni, hi: (0, 0)),
                pl.BlockSpec((c, 1), lambda ni, hi: (0, 0)),
            ],
            scratch_shapes=[pltpu.VMEM((c, 1), jnp.float32),
                            pltpu.VMEM((c, 1), jnp.float32)]),
        compiler_params=pltpu.CompilerParams(
            dimension_semantics=("arbitrary", "arbitrary"),
            vmem_limit_bytes=_VMEM_LIMIT),
    )(y_flat, g2, b2)

    out = pl.pallas_call(
        _bn_selu_apply_kernel,
        out_shape=jax.ShapeDtypeStruct(y_flat.shape, y_flat.dtype),
        grid_spec=pltpu.PrefetchScalarGridSpec(
            num_scalar_prefetch=0,
            grid=grid,
            in_specs=[
                pl.BlockSpec((1, c, thw), lambda ni, hi: (ni, 0, hi)),
                pl.BlockSpec((c, 1), lambda ni, hi: (0, 0)),
                pl.BlockSpec((c, 1), lambda ni, hi: (0, 0)),
            ],
            out_specs=pl.BlockSpec((1, c, thw), lambda ni, hi: (ni, 0, hi))),
        compiler_params=pltpu.CompilerParams(
            dimension_semantics=("parallel", "parallel"),
            vmem_limit_bytes=_VMEM_LIMIT),
    )(y_flat, scale, shift)
    return out


# ---------------------------------------------------------------------------
# Module forward (Conv -> optional BN+SELU), NCHW in / NCHW out
# ---------------------------------------------------------------------------
def conv_forward(x, weight, bias=None, *, stride=1, padding=0, dilation=(1, 1),
                 groups=1, bn_acti=False, gamma=None, beta=None):
    stride, padding, dilation = _pair(stride), _pair(padding), _pair(dilation)
    y_flat, hw, hout, wout = conv2d_pallas(x, weight, bias, stride, padding,
                                           dilation, groups)
    if bn_acti:
        y_flat = bn_selu_pallas(y_flat, gamma, beta, hw)
    n = x.shape[0]
    cout = weight.shape[0]
    return y_flat[:, :, :hw].reshape(n, cout, hout, wout)


# ---------------------------------------------------------------------------
# Pure-JAX reference
# ---------------------------------------------------------------------------
def _reference(x, weight, bias, stride, padding, dilation, groups, bn_acti,
               gamma, beta):
    ph, pw = padding
    y = lax.conv_general_dilated(
        x.astype(jnp.float32), weight.astype(jnp.float32),
        window_strides=stride, padding=[(ph, ph), (pw, pw)],
        rhs_dilation=dilation, feature_group_count=groups,
        dimension_numbers=("NCHW", "OIHW", "NCHW"),
        precision=lax.Precision.HIGHEST)
    if bias is not None:
        y = y + bias.reshape(1, -1, 1, 1)
    if bn_acti:
        mean = jnp.mean(y, axis=(0, 2, 3), keepdims=True)
        var = jnp.mean((y - mean) ** 2, axis=(0, 2, 3), keepdims=True)
        yh = (y - mean) / jnp.sqrt(var + _BN_EPS)
        z = yh * gamma.reshape(1, -1, 1, 1) + beta.reshape(1, -1, 1, 1)
        y = _SELU_SCALE * jnp.where(z > 0, z, _SELU_ALPHA * (jnp.exp(z) - 1.0))
    return y.astype(x.dtype)


if __name__ == "__main__":
    key = jax.random.PRNGKey(0)
    k1, k2, k3, k4, k5 = jax.random.split(key, 5)

    # Case 1: Conv(nIn=4, nOut=8, kSize=3, stride=1, padding=1, bn_acti=True)
    n, cin, h, w = 2, 4, 16, 16
    cout, ks = 8, 3
    x = jax.random.normal(k1, (n, cin, h, w), dtype=jnp.float32)
    wgt = jax.random.normal(k2, (cout, cin, ks, ks), dtype=jnp.float32) * 0.2
    gamma = 1.0 + 0.1 * jax.random.normal(k3, (cout,), dtype=jnp.float32)
    beta = 0.1 * jax.random.normal(k4, (cout,), dtype=jnp.float32)

    out = conv_forward(x, wgt, None, stride=1, padding=1, dilation=(1, 1),
                       groups=1, bn_acti=True, gamma=gamma, beta=beta)
    out = jax.block_until_ready(out)
    ref = _reference(x, wgt, None, (1, 1), (1, 1), (1, 1), 1, True, gamma, beta)
    assert out.shape == ref.shape
    assert jnp.allclose(out, ref, atol=1e-3, rtol=1e-3), \
        float(jnp.max(jnp.abs(out - ref)))

    # Case 2: strided conv (ragged HW -> exercises lane padding + masking)
    cout2 = 6
    wgt2 = jax.random.normal(k5, (cout2, cin, ks, ks), dtype=jnp.float32) * 0.2
    gamma2 = jnp.ones((cout2,), dtype=jnp.float32)   # BatchNorm2d init values
    beta2 = jnp.zeros((cout2,), dtype=jnp.float32)
    out2 = conv_forward(x, wgt2, None, stride=2, padding=1, dilation=(1, 1),
                        groups=1, bn_acti=True, gamma=gamma2, beta=beta2)
    out2 = jax.block_until_ready(out2)
    ref2 = _reference(x, wgt2, None, (2, 2), (1, 1), (1, 1), 1, True,
                      gamma2, beta2)
    assert out2.shape == ref2.shape
    assert jnp.allclose(out2, ref2, atol=1e-3, rtol=1e-3), \
        float(jnp.max(jnp.abs(out2 - ref2)))

    print("KERNEL_OK")
</pallas_src>

<mosaic_0001>
module attributes {stable_mosaic.version = 11 : i64} {
  func.func @_conv_mm_kernel(%arg0: i32, %arg1: i32, %arg2: memref<8x36xf32, #tpu.memory_space<vmem>>, %arg3: memref<8x1xf32, #tpu.memory_space<vmem>>, %arg4: memref<1x36x256xf32, #tpu.memory_space<vmem>>, %arg5: memref<1x8x256xf32, #tpu.memory_space<vmem>>) attributes {dimension_semantics = [#tpu.dimension_semantics<parallel>, #tpu.dimension_semantics<parallel>], iteration_bounds = array<i64: 2, 1>, scalar_prefetch = 0 : i64, scratch_operands = 0 : i64, tpu.core_type = #tpu.core_type<tc>, window_params = [{pipeline_mode = #tpu.pipeline_mode<synchronous>, transform_indices = @transform_0, window_bounds = array<i64: 8, 36>}, {pipeline_mode = #tpu.pipeline_mode<synchronous>, transform_indices = @transform_1, window_bounds = array<i64: 8, 1>}, {transform_indices = @transform_2, window_bounds = array<i64: 1, 36, 256>}, {transform_indices = @transform_3, window_bounds = array<i64: 1, 8, 256>}]} {
    %c0 = arith.constant 0 : index
    %c0_0 = arith.constant 0 : index
    %0 = vector.load %arg2[%c0, %c0_0] : memref<8x36xf32, #tpu.memory_space<vmem>>, vector<8x36xf32>
    %c0_1 = arith.constant 0 : index
    %c0_2 = arith.constant 0 : index
    %c0_3 = arith.constant 0 : index
    %1 = vector.load %arg4[%c0_1, %c0_2, %c0_3] : memref<1x36x256xf32, #tpu.memory_space<vmem>>, vector<1x36x256xf32>
    %2 = vector.shape_cast %1 : vector<1x36x256xf32> to vector<36x256xf32>
    %cst = arith.constant dense<0.000000e+00> : vector<8x256xf32>
    %3 = tpu.matmul %0, %2, %cst {dimension_numbers = #tpu.dot_dimension_numbers<[1], [0], [0], [1], [0, 0, 1, 1], [], []>, precision = #tpu.contract_precision<fp32>} : vector<8x36xf32>, vector<36x256xf32>, vector<8x256xf32> -> vector<8x256xf32>
    %c0_4 = arith.constant 0 : index
    %c0_5 = arith.constant 0 : index
    %4 = vector.load %arg3[%c0_4, %c0_5] : memref<8x1xf32, #tpu.memory_space<vmem>>, vector<8x1xf32>
    %5 = vector.broadcast %4 : vector<8x1xf32> to vector<8x256xf32>
    %6 = arith.addf %3, %5 : vector<8x256xf32>
    %c0_6 = arith.constant 0 : index
    %c0_7 = arith.constant 0 : index
    %c0_8 = arith.constant 0 : index
    %7 = vector.load %arg5[%c0_6, %c0_7, %c0_8] : memref<1x8x256xf32, #tpu.memory_space<vmem>>, vector<1x8x256xf32>
    %8 = vector.shape_cast %7 : vector<1x8x256xf32> to vector<8x256xf32>
    %9 = vector.shape_cast %6 : vector<8x256xf32> to vector<1x8x256xf32>
    tpu.vector_store %arg5[%c0_6, %c0_7, %c0_8], %9 {strides = array<i32>} : memref<1x8x256xf32, #tpu.memory_space<vmem>>, vector<1x8x256xf32>,
    return
  }
  func.func @transform_0(%arg0: i32, %arg1: i32) -> (i32, i32) {
    %c0_i32 = arith.constant 0 : i32
    %c0_i32_0 = arith.constant 0 : i32
    %c0_i32_1 = arith.constant 0 : i32
    return %c0_i32, %c0_i32_0 : i32, i32
  }
  func.func @transform_1(%arg0: i32, %arg1: i32) -> (i32, i32) {
    %c0_i32 = arith.constant 0 : i32
    %c0_i32_0 = arith.constant 0 : i32
    %c0_i32_1 = arith.constant 0 : i32
    return %c0_i32, %c0_i32_0 : i32, i32
  }
  func.func @transform_2(%arg0: i32, %arg1: i32) -> (i32, i32, i32) {
    %c0_i32 = arith.constant 0 : i32
    %c0_i32_0 = arith.constant 0 : i32
    return %arg0, %c0_i32, %arg1 : i32, i32, i32
  }
  func.func @transform_3(%arg0: i32, %arg1: i32) -> (i32, i32, i32) {
    %c0_i32 = arith.constant 0 : i32
    %c0_i32_0 = arith.constant 0 : i32
    return %arg0, %c0_i32, %arg1 : i32, i32, i32
  }
}

</mosaic_0001>

<bundles_post_ra>
// kernel: tpu_custom_call.1
= control target key start
LH: loop header
LB: loop body
LE: loop exit
PB: predicated region body
PF: predicated region fallthrough
CT: control target
= control target key end

     0   :  { %8 = vsyncpa [#allocation3], 0  ;;  %s1348_s0 = inlined_call_operand.vmem [shape: f32[8,36], index: 0, kind: input, shape index: {}]   ;;  %s1349_s1 = inlined_call_operand.vmem [shape: f32[8,1], index: 1, kind: input, shape index: {}]   ;;  %s1350_s2 = inlined_call_operand.vmem [shape: f32[2,36,256], index: 2, kind: input, shape index: {}]   ;;  %s1351_s3 = inlined_call_operand.hbm [shape: f32[2,8,256], index: 3, kind: output, shape index: {}]  }
   0x1   :  { %10 = vsyncpa [#allocation3 + $0x1], 0  ;;  %s1127_s12 = smov 0   ;;  %s1129_s13 = smov 0  }
   0x2   :  { %s1131_s14 = smov 0   ;;  %s1133_s15 = smov 0  }
   0x3   :  { %s1135_s16 = smov 0   ;;  %s1137_s17 = smov 0  }
   0x4 LB: > { %s892_s18 = sadd.s32 4294967295, %s1102_s17   ;;  %s893_s19 = sadd.s32 4294967294, %s1102_s17   ;;  %s1102_s17 = sphi %s1137_s17, %s16_s17   ;;  %s1098_s16 = sphi %s1135_s16, %s1358_s16   ;;  %s1094_s15 = sphi %s1133_s15, %s1357_s15   ;;  %s1090_s14 = sphi %s1131_s14, %s1356_s14   ;;  %s1086_s13 = sphi %s1129_s13, %s1355_s13   ;;  %s1082_s12 = sphi %s1127_s12, %s1354_s12  }
   0x5   : > { %s28_s20 = sadd.s32 1, %s1098_s16  ;;  %s107_s21 = sadd.s32 1, %s1090_s14 }
   0x6   : > { %p30_p0 = scmp.ge.s32.totalorder %s28_s20, 2  ;;  %p117_p1 = scmp.ne.s32.totalorder %s1090_s14, %s1086_s13 }
   0x7   : > { %p118_p2 = scmp.eq.s32.totalorder %s892_s18, 1  ;;  %p123_p3 = scmp.ne.s32.totalorder %s1086_s13, %s1082_s12 }
   0x8   : > { %s1360_s20 = smov (%p30_p0, %s28_s20), 0  ;;  %p124_p5 = scmp.eq.s32.totalorder %s893_s19, 1 }
   0x9   : > { %p1167_p4 = por %p118_p2, %p117_p1  ;;  %s102_s23 = ssub.s32 %s1098_s16, %s1360_s20 }
   0xa   : > { %p896_p6 = scmp.ge.s32.totalorder %s1102_s17, 1  ;;  %p105_p7 = scmp.eq.s32.totalorder %s102_s23, 0 }
   0xb   : > { %p1174_p8 = por %p124_p5, %p123_p3  ;;  %p161_p9 = scmp.lt.s32.totalorder %s1102_s17, 3 }
   0xc   : > { %s1180_s25 = scalar_select %p105_p7, %s1090_s14, %s107_s21  }
   0xd   : > { %p162_p10 = pnand %p896_p6, %p161_p9 }
   0xe   : > { %p190_p11 = scmp.lt.s32.totalorder (!%p162_p10), %s1094_s15, 1  ;;  %v200_v0 = vld [vmem:[%s1348_s0] sm:$0xff] (!%p162_p10)  ;;  %vm217_vm0 = vcmask (!%p162_p10), 293888   ;;  %v1104_v1 = vmov (!%p162_p10), 0.0   ;;  %v1105_v5 = vmov (!%p162_p10), 0   ;;  %vm221_vm1 = vcmask (!%p162_p10), 1043456  }
   0xf   : > { %165 = sbr.rel (%p162_p10) target bundleno = 295 (0x127), region = 32  ;;  %302 = vmatprep.mubr.f32.mxu1 (!%p162_p10), %v1104_v1  ;;  %603 = vmatprep.mubr.f32.mxu0 (!%p162_p10), %v1104_v1  ;;  %v219_v2 = vsel (!%p162_p10), %vm217_vm0, %v200_v0, 0  ;;  %v211_v3 = vld [vmem:[%s1349_s1] sm:$0xff] (!%p162_p10)  ;;  %s186_s8 = sand.u32 (!%p162_p10), 1, %s1086_s13  }
  0x10   : > { %v1192_v4 = vand.u32 (!%p162_p10), 4294901760, %v219_v2  ;;  %1023 = vset.pattern.permute.xlu0 (!%p162_p10), %v1105_v5  ;;  %s897_s9 = sshll.u32 (!%p162_p10), %s186_s8, 4  ;;  %s904_s10 = sshll.u32 (!%p162_p10), %s1094_s15, 8 }
  0x11   : > { %214 = vperm.xlu0 (!%p162_p10), %1023, %v211_v3   ;;  %s188_s11 = scalar_lea.vmem (!%p162_p10), [#allocation2], %s897_s9  ;;  %s1301_s23 = scalar_lea.hbm (!%p162_p10), %s1351_s3, %s904_s10 }
  0x12   : > { %v1195_v6 = vsub.f32 (!%p162_p10), %v219_v2, %v1192_v4  ;;  %s816_s18 = sshll.u32 (!%p162_p10), %s188_s11, 4  ;;  %s800_s26 = scalar_lea.sflag (!%p162_p10), [#allocation3], %s186_s8  ;;  %s1303_s18 = int_to_ptr.vmem [resolvable:$true] %s816_s18 }
  0x13   : > { %s1024_s27 = scalar_lea.vmem (!%p162_p10), %s1303_s18, 256 }
  0x14   : > { %v305_v7 = vand.u32 (!%p162_p10), 4294901760, %v1195_v6  ;;  %p1025_p12 = scmp.ne.s32.totalorder (!%p162_p10), %s1303_s18, %s1024_s27 }
  0x16   : > { %s191_s30 = scalar_select %p190_p11, %s1094_s15, 1  ;;  %v1210_v27 = vsub.f32 %v1195_v6, %v305_v7 }
  0x17   : > { %p1026_p13 = pnand %p1025_p12, %p1167_p4  ;;  %s1106_s15 = smov [#allocation2]  }
  0x18   : > { %s965_s4 = smul.u32 80, %s191_s30  ;;  %v307_v48 = vand.u32 4294901760, %v1210_v27  ;;  %s1028_s28 = sshll.u32 %s1106_s15, 4  ;;  %s1029_s28 = int_to_ptr.vmem [resolvable:$false] %s1028_s28 }
  0x19   : > { %p1027_p0 = pneg %p1026_p13  ;;  %s1030_s29 = scalar_lea.vmem %s1029_s28, 512 }
  0x1a   : > { %s197_s7 = scalar_lea.vmem %s1350_s2, %s965_s4  ;;  %p1031_p1 = scmp.lt.s32.totalorder %s1303_s18, %s1029_s28 }
  0x1b   : > { %v202_v8 = vld [vmem:[%s197_s7 + $0x8] sm:$0xff]  ;;  %v204_v9 = vld [vmem:[%s197_s7 + $0x18] sm:$0xff]  ;;  %v201_v10 = vld [vmem:[%s197_s7] sm:$0xff]  ;;  %p1032_p2 = scmp.lt.s32.totalorder %s1030_s29, %s1024_s27 }
  0x1c   : > { %v228_v11 = vand.u32 4294901760, %v202_v8  ;;  %v232_v12 = vand.u32 4294901760, %v204_v9  ;;  %v203_v13 = vld [vmem:[%s197_s7 + $0x10] sm:$0xff]  ;;  %v230_v14 = vand.u32 4294901760, %v201_v10  ;;  %v206_v15 = vld [vmem:[%s197_s7 + $0x28] sm:$0xff]  ;;  %v208_v16 = vld [vmem:[%s197_s7 + $0x38] sm:$0xff] }
  0x1d   : > { %v234_v17 = vand.u32 4294901760, %v203_v13  ;;  %v236_v18 = vand.u32 4294901760, %v206_v15  ;;  %v240_v19 = vand.u32 4294901760, %v208_v16  ;;  %v205_v20 = vld [vmem:[%s197_s7 + $0x20] sm:$0xff]  ;;  %v207_v21 = vld [vmem:[%s197_s7 + $0x30] sm:$0xff]  ;;  %p1033_p3 = por %p1032_p2, %p1031_p1 }
  0x1e   : > { %v1201_v22 = vpack.c.bf16 %v232_v12, %v228_v11  ;;  %v1203_v23 = vsub.f32 %v202_v8, %v228_v11  ;;  %v1205_v24 = vsub.f32 %v204_v9, %v232_v12  ;;  %v210_v25 = vld [vmem:[%s197_s7 + $0x48] sm:$0xf]  ;;  %v209_v26 = vld [vmem:[%s197_s7 + $0x40] sm:$0xf]  ;;  %v1214_v29 = vsub.f32 %v201_v10, %v230_v14 }
  0x1f   : > { %v1212_v28 = vpack.c.bf16 %v234_v17, %v230_v14  ;;  %v1216_v30 = vsub.f32 %v203_v13, %v234_v17  ;;  %v1218_v31 = vpack.c.bf16 %v240_v19, %v236_v18  ;;  %v1222_v32 = vsub.f32 %v206_v15, %v236_v18  ;;  %p1034_p5 = pnand %p1033_p3, %p1027_p0 }
  0x20   : > { %906 = vmatprep.subr.bf16.mxu1 %v1201_v22  ;;  %930 = vmatprep.subr.bf16.mxu0 %v1201_v22  ;;  %v238_v33 = vand.u32 4294901760, %v205_v20  ;;  %v242_v34 = vand.u32 4294901760, %v207_v21  ;;  %v226_v35 = vsel %vm221_vm1, %v210_v25, 0  ;;  %v1227_v36 = vsub.f32 %v208_v16, %v240_v19 }
  0x21   : > { %908 = vmatpush1.bf16.msra.mxu1 %v1212_v28  ;;  %932 = vmatpush1.bf16.msra.mxu0 %v1212_v28  ;;  %v223_v37 = vsel %vm221_vm1, %v209_v26, 0  ;;  %v316_v38 = vand.u32 4294901760, %v1203_v23  ;;  %v328_v39 = vand.u32 4294901760, %v1205_v24  ;;  %v1240_v43 = vand.u32 4294901760, %v226_v35 }
  0x22   : > { %910 = vmatprep.subr.bf16.mxu1 %v1218_v31  ;;  %934 = vmatprep.subr.bf16.mxu0 %v1218_v31  ;;  %v1234_v40 = vpack.c.bf16 %v242_v34, %v238_v33  ;;  %v1236_v41 = vsub.f32 %v205_v20, %v238_v33  ;;  %v1238_v42 = vsub.f32 %v207_v21, %v242_v34  ;;  %v1242_v44 = vand.u32 4294901760, %v223_v37 }
  0x23   : > { %v317_v45 = vsub.f32 %v1203_v23, %v316_v38  ;;  %v329_v46 = vsub.f32 %v1205_v24, %v328_v39  ;;  %v937_v47 = vpack.c.bf16 %v328_v39, %v316_v38  ;;  %v322_v49 = vand.u32 4294901760, %v1214_v29 }
  0x24   : > { %v334_v50 = vand.u32 4294901760, %v1216_v30  ;;  %v340_v51 = vand.u32 4294901760, %v1222_v32  ;;  %v352_v54 = vand.u32 4294901760, %v1227_v36  ;;  %v346_v55 = vand.u32 4294901760, %v1236_v41 }
  0x25   : > { %912 = vmatpush1.bf16.msra.mxu1 %v1234_v40  ;;  %936 = vmatpush1.bf16.msra.mxu0 %v1234_v40  ;;  %v318_v52 = vand.u32 4294901760, %v317_v45  ;;  %v330_v53 = vand.u32 4294901760, %v329_v46  ;;  %v1257_v56 = vsub.f32 %v223_v37, %v1242_v44  ;;  %v323_v57 = vsub.f32 %v1214_v29, %v322_v49 }
  0x26   : > { %245 = vmatprep.subr.mxu1 %v1240_v43  ;;  %546 = vmatprep.subr.mxu0 %v1240_v43  ;;  %v335_v58 = vsub.f32 %v1216_v30, %v334_v50  ;;  %v358_v59 = vand.u32 4294901760, %v1238_v42  ;;  %v939_v61 = vpack.c.bf16 %v334_v50, %v322_v49  ;;  %v341_v62 = vsub.f32 %v1222_v32, %v340_v51 }
  0x27   : > { %v913_v60 = vpack.c.bf16 %v330_v53, %v318_v52  ;;  %v353_v63 = vsub.f32 %v1227_v36, %v352_v54  ;;  %v324_v0 = vand.u32 4294901760, %v323_v57  ;;  %v347_v3 = vsub.f32 %v1236_v41, %v346_v55 }
  0x28   : > { %v336_v2 = vand.u32 4294901760, %v335_v58  ;;  %v359_v5 = vsub.f32 %v1238_v42, %v358_v59  ;;  %v342_v8 = vand.u32 4294901760, %v341_v62  ;;  %v941_v10 = vpack.c.bf16 %v352_v54, %v340_v51 }
  0x29   : > { %247 = vmatpush1.msra.mxu1 %v1242_v44  ;;  %548 = vmatpush1.msra.mxu0 %v1242_v44  ;;  %v354_v9 = vand.u32 4294901760, %v353_v63  ;;  %v363_v11 = vsub.f32 %v226_v35, %v1240_v43  ;;  %v348_v13 = vand.u32 4294901760, %v347_v3  ;;  %v370_v15 = vand.u32 4294901760, %v1257_v56 }
  0x2a   : > { %914 = vmatprep.subr.bf16.mxu1 %v913_v60  ;;  %938 = vmatprep.subr.bf16.mxu0 %v937_v47  ;;  %v915_v12 = vpack.c.bf16 %v336_v2, %v324_v0  ;;  %v360_v14 = vand.u32 4294901760, %v359_v5  ;;  %v943_v19 = vpack.c.bf16 %v358_v59, %v346_v55  ;;  %v923_v27 = vpack.c.bf16 %v1216_v30, %v1214_v29 }
  0x2b   : > { %308 = vmatmul.mubr.f32.vlgmr.msra.gmra.mrb[0].mxu1 %v307_v48  ;;  %607 = vmatmul.mubr.f32.vlgmr.msra.gmra.mrb[0].mxu0 %v305_v7  ;;  %v917_v16 = vpack.c.bf16 %v354_v9, %v342_v8  ;;  %v364_v17 = vand.u32 4294901760, %v363_v11  ;;  %v371_v20 = vsub.f32 %v1257_v56, %v370_v15  ;;  %v921_v7 = vpack.c.bf16 %v1205_v24, %v1203_v23 }
  0x2c   : > { %916 = vmatpush1.bf16.msra.mxu1 %v915_v12  ;;  %940 = vmatpush1.bf16.msra.mxu0 %v939_v61  ;;  %v919_v18 = vpack.c.bf16 %v360_v14, %v348_v13  ;;  %v925_v33 = vpack.c.bf16 %v1227_v36, %v1222_v32  ;;  %v927_v23 = vpack.c.bf16 %v1238_v42, %v1236_v41 }
  0x2d   : > { %918 = vmatprep.subr.bf16.mxu1 %v917_v16  ;;  %942 = vmatprep.subr.bf16.mxu0 %v941_v10  ;;  %v365_v21 = vsub.f32 %v363_v11, %v364_v17  ;;  %v372_v26 = vand.u32 4294901760, %v371_v20 }
  0x2e   : > { %428 = vmatprep.mubr.f32.mxu1 %v1104_v1  ;;  %707 = vmatprep.mubr.f32.mxu0 %v1104_v1 }
  0x2f   : > { %v366_v25 = vand.u32 4294901760, %v365_v21 }
  0x30   : > { %920 = vmatpush1.bf16.msra.mxu1 %v919_v18  ;;  %944 = vmatpush1.bf16.msra.mxu0 %v943_v19 }
  0x31   : > { %367 = vmatprep.subr.mxu1 %v366_v25  ;;  %648 = vmatprep.subr.mxu0 %v364_v17 }
  0x34   : > { %373 = vmatpush1.msra.mxu1 %v372_v26  ;;  %652 = vmatpush1.msra.mxu0 %v370_v15 }
  0x35   : > { %922 = vmatprep.subr.bf16.mxu1 %v921_v7  ;;  %946 = vmatprep.subr.bf16.mxu0 %v1201_v22 }
  0x36   : > { %430 = vmatmul.mubr.f32.vlgmr.msra.gmra.mrb[0].mxu1 %v1192_v4  ;;  %709 = vmatmul.mubr.f32.vlgmr.msra.gmra.mrb[0].mxu0 %v1192_v4 }
  0x37   : > { %924 = vmatpush1.bf16.msra.mxu1 %v923_v27  ;;  %948 = vmatpush1.bf16.msra.mxu0 %v1212_v28 }
  0x38   : > { %926 = vmatprep.subr.bf16.mxu1 %v925_v33  ;;  %950 = vmatprep.subr.bf16.mxu0 %v1218_v31 }
  0x39   : > { %520 = vmatprep.mubr.f32.mxu1 %v1104_v1  ;;  %789 = vmatprep.mubr.f32.mxu0 %v1104_v1 }
  0x3b   : > { %928 = vmatpush1.bf16.msra.mxu1 %v927_v23  ;;  %952 = vmatpush1.bf16.msra.mxu0 %v1234_v40 }
  0x3c   : > { %462 = vmatprep.subr.mxu1 %v363_v11  ;;  %732 = vmatprep.subr.mxu0 %v1240_v43 }
  0x3f   : > { %465 = vmatpush1.msra.mxu1 %v1257_v56  ;;  %734 = vmatpush1.msra.mxu0 %v1242_v44 }
  0x40   : > { %523 = vmatmul.mubr.f32.vlgmr.msra.gmra.mrb[0].mxu1 %v1195_v6  ;;  %791 = vmatmul.mubr.f32.vlgmr.msra.gmra.mrb[0].mxu0 %v1192_v4 }
  0x90   : > { %v215_v22 = vpop.permute.xlu0 %214 }
 0x113   : > { %v524_v24 = vpop.f32.mrb[0].mxu1  ;;  %v792_v1 = vpop.f32.mrb[0].mxu0 }
 0x114   : > { %v953_v28 = vadd.f32 %v524_v24, %v215_v22  ;;  %v526_v29 = vpop.f32.mrb[1].mxu1  ;;  %v794_v30 = vpop.f32.mrb[1].mxu0 }
 0x115   : > { %v955_v31 = vadd.f32 %v526_v29, %v215_v22 }
 0x116   : > { %v954_v32 = vadd.f32 %v953_v28, %v792_v1 }
 0x117   : > { %v956_v34 = vadd.f32 %v955_v31, %v794_v30 }
 0x118   : > { %797 = vst [vmem:[%s188_s11] sm:$0xff] %v954_v32 }
 0x119   : > { %798 = vst [vmem:[%s188_s11 + $0x8] sm:$0xff] %v956_v34 }
 0x11a   : > { %1037 = shalt.err (!%p1034_p5)
}
 0x11b   : > { %s1038_s30 = scalar_lea.hbm %s1301_s23, 256  ;;  %s1042_s6 = scalar_lea.hbm %s1351_s3, 512 }
 0x11c   : > { %p1039_p6 = scmp.ne.s32.totalorder %s1301_s23, %s1038_s30  ;;  %p1043_p10 = scmp.lt.u32.totalorder %s1301_s23, %s1351_s3 }
 0x11d   : > { %p1044_p11 = scmp.lt.u32.totalorder %s1042_s6, %s1038_s30  ;;  %p1046_p13 = scmp.lt.u32.totalorder %s1038_s30, %s1301_s23 }
 0x11e   : > { %p1040_p7 = pnand %p1039_p6, %p1167_p4 }
 0x11f   : > { %p1045_p12 = por %p1044_p11, %p1043_p10 }
 0x120   : > { %p1041_p9 = pneg %p1040_p7 }
 0x121   : > { %p1047_p0 = por %p1046_p13, %p1045_p12 }
 0x123   : > { %p1048_p1 = pnand %p1047_p0, %p1041_p9 }
 0x125   : > { %1051 = shalt.err (!%p1048_p1)
}
 0x126   : > { %966 = dma.vmem_to_hbm [thread:$0]  (%p1167_p4), %s1303_s18, 256, %s1301_s23, %s800_s26  }
 0x127 PF: > { %p972_p2 = scmp.ge.s32.totalorder %s1102_s17, 2  ;;  %s828_s9 = sand.u32 1, %s1082_s12  }
 0x128   : > { %s829_s10 = scalar_lea.sflag [#allocation3], %s828_s9 }
 0x129   : > { %p969_p3 = pnand %p972_p2, %p1174_p8 }
 0x12b   : > { %1077 = dma.done.wait (!%p969_p3), %s829_s10, 256  }
 0x12c   : > { %1079 = vsyncadd (!%p969_p3), %s829_s10, 4294967040  ;;  %s16_s17 = sadd.s32 1, %s1102_s17   ;;  %s1354_s12 = smov %s1086_s13 }
 0x12d   : > { %p13_p5 = scmp.ge.s32.totalorder %s16_s17, 4   ;;  %s1355_s13 = smov %s1090_s14 }
 0x12e   : > { %s1356_s14 = smov %s1180_s25  ;;  %s1357_s15 = smov %s1098_s16 }
 0x12f   : > { %s1358_s16 = smov %s1360_s20  ;;  %15 = sbr.rel (!%p13_p5) target bundleno = 4 (0x4), region = 67 }
 0x136   :  { %834 = vsyncpa [#allocation3], 1 }
 0x137   :  { %836 = vsyncpa [#allocation3 + $0x1], 1 }

</bundles_post_ra>
